<compile_context>
chip_gen: v7x
topology: tpu7x:2x2x1
jax: 0.10.0
libtpu: 0.0.40
codegen_flags: <defaults>
</compile_context>

<pallas_src>
import math

import jax
import jax.numpy as jnp
from jax.experimental import pallas as pl
from jax.experimental.pallas import tpu as pltpu


def _round_up(x: int, m: int) -> int:
    return ((x + m - 1) // m) * m


# ----------------------------- fused Pallas kernel ---------------------------
def _make_mlp_kernel(num_hidden_layers: int):
    """Fused MLP: x -> [Linear+ReLU]*num_hidden -> Linear(1).

    Ref order: x, (w_i bf16, b_i f32) * num_hidden, w_out_row f32 (1,H),
               b_out f32 (1,1), out.
    Intermediate activations live in vregs/VMEM; the only HBM store is the
    (tb, 1) head result.
    """
    def kernel(x_ref, *refs):
        out_ref = refs[-1]
        p = refs[:-1]

        x_bf = x_ref[...]                              # bf16 MXU operand
        if num_hidden_layers == 0:
            h = x_bf.astype(jnp.float32)               # degenerate: no hidden layer
        idx = 0
        for _ in range(num_hidden_layers):
            w, b = p[idx], p[idx + 1]
            idx += 2
            # bf16 x bf16 -> f32 accumulate on the MXU; bias + ReLU on the VPU in f32.
            h = jnp.dot(x_bf, w[...], preferred_element_type=jnp.float32)
            h = jnp.maximum(h + b[...], 0.0)
            x_bf = h.astype(jnp.bfloat16)

        # Head (out_features == 1): VPU multiply + XLU lane reduction instead of an
        # MXU dot with N=1.
        w_row = p[idx][...]                            # (1, H) f32
        b_out = p[idx + 1][...]                        # (1, 1) f32
        y = jnp.sum(h * w_row, axis=-1, keepdims=True) + b_out
        out_ref[...] = y.astype(out_ref.dtype)

    return kernel


# ------------------------------ tiling helpers --------------------------------
def _batch_tiling(batch: int, max_tile: int = 512):
    """Return (padded_batch, tile).

    tile is a multiple of 8 (sublane aligned) and <= max_tile; padded_batch is a
    multiple of tile.  Batches larger than max_tile get >= 2 near-equal grid
    points (megacore-friendly), and padding waste is at most ~8*(n_tiles-1)+7 rows.
    """
    b8 = _round_up(max(batch, 1), 8)
    n_tiles = -(-b8 // max_tile)                       # ceil
    tile = _round_up(-(-b8 // n_tiles), 8)
    return n_tiles * tile, tile


def _estimate_vmem_bytes(tile: int, k_in: int, widths) -> int:
    """Rough per-grid-step VMEM footprint (double-buffered tiles + resident params
    + in-flight activations), with 1.5x margin."""
    total = 2 * tile * k_in * 2 + 2 * tile * 4         # x tile (bf16) + out tile (f32)
    prev = k_in
    for h in widths:
        total += 2 * (prev * h * 2 + h * 4)            # resident w (bf16) + b (f32), 2 bufs
        prev = h
    total += 2 * (prev + 1) * 4                        # head row + bias (f32)
    widest = max([k_in, 1] + list(widths))
    total += 6 * tile * widest * 4                     # a few live f32/bf16 activation copies
    return int(total * 1.5)


# ------------------------------- forward pass --------------------------------
def value_network_forward(state, action, params):
    state = state.astype(jnp.float32)
    action = action.astype(jnp.float32)
    B = state.shape[0]

    hidden = params["hidden"]                          # list of (w bf16 (I,O), b f32 (1,O))
    w_out_row, b_out = params["out"]                   # (1, H) f32, (1, 1) f32
    num_hidden = len(hidden)

    # Concat is an 8-wide lane op -- far cheaper than a second MXU fill/drain.
    x = jnp.concatenate([state, action], axis=1).astype(jnp.bfloat16)
    k_in = x.shape[1]

    b_pad, tb = _batch_tiling(B)
    if b_pad != B:
        x = jnp.pad(x, ((0, b_pad - B), (0, 0)))

    flat_params = []
    for w, b in hidden:
        flat_params += [w, b]
    flat_params += [w_out_row, b_out]

    def _resident(arr):
        # Full-array block, same block index for every batch tile -> stays resident.
        return pl.BlockSpec(arr.shape, lambda i: (0, 0))

    in_specs = [pl.BlockSpec((tb, k_in), lambda i: (i, 0))] + \
               [_resident(a) for a in flat_params]

    widths = [w.shape[1] for w, _ in hidden]
    vmem_est = min(_estimate_vmem_bytes(tb, k_in, widths), 96 * 2**20)
    # Only override the compiler default when we would actually exceed the
    # smallest (v5e, 16 MiB) default scoped-VMEM budget.
    vmem_limit = vmem_est if vmem_est > 16 * 2**20 else None

    out = pl.pallas_call(
        _make_mlp_kernel(num_hidden),
        out_shape=jax.ShapeDtypeStruct((b_pad, 1), jnp.float32),
        grid=(b_pad // tb,),
        in_specs=in_specs,
        out_specs=pl.BlockSpec((tb, 1), lambda i: (i, 0)),
        compiler_params=pltpu.CompilerParams(
            dimension_semantics=("parallel",),         # v7x: split batch tiles across TCs
            vmem_limit_bytes=vmem_limit),
    )(x, *flat_params)

    return out[:B]


value_network_forward_jit = jax.jit(value_network_forward)


# --------------------------- parameter construction --------------------------
def init_value_network_params(num_inputs, num_actions, hidden_sizes, seed):
    """Deterministic init mirroring nn.Linear's default U(-1/sqrt(fan_in), +..).

    Hidden-layer weights are stored (in, out) in bf16 (native MXU operand dtype);
    biases stay f32 as (1, out).  The final Linear(H, 1) is stored as a (1, H)
    f32 row plus a (1, 1) f32 bias because the kernel computes the head on the
    VPU (multiply + lane reduction) rather than the MXU.
    """
    sizes = [num_inputs + num_actions] + list(hidden_sizes) + [1]
    key = jax.random.PRNGKey(seed)
    raw = []
    for i, o in zip(sizes[:-1], sizes[1:]):
        key, kw, kb = jax.random.split(key, 3)
        bound = 1.0 / math.sqrt(i)
        w = jax.random.uniform(kw, (i, o), jnp.float32, minval=-bound, maxval=bound)
        b = jax.random.uniform(kb, (1, o), jnp.float32, minval=-bound, maxval=bound)
        raw.append((w, b))

    hidden = [(w.astype(jnp.bfloat16), b) for w, b in raw[:-1]]
    w_last, b_last = raw[-1]
    return {
        "hidden": hidden,
        "out": (w_last.T, b_last),                     # (1, H) f32 row, (1, 1) f32 bias
    }


# ------------------------------ pure-JAX references ---------------------------
def _reference_forward(state, action, params):
    """Same math as the kernel (bf16 MXU operands, f32 accumulate/elementwise)."""
    x = jnp.concatenate([state, action], axis=1).astype(jnp.bfloat16)
    h = x.astype(jnp.float32)
    for w, b in params["hidden"]:
        h = jnp.maximum(jnp.dot(x, w, preferred_element_type=jnp.float32) + b, 0.0)
        x = h.astype(jnp.bfloat16)
    w_row, b_out = params["out"]
    return jnp.sum(h * w_row, axis=-1, keepdims=True) + b_out


def _reference_forward_f32(state, action, params):
    """Full-f32 evaluation of the same MLP (module semantics, no bf16 rounding
    of activations)."""
    x = jnp.concatenate([state, action], axis=1).astype(jnp.float32)
    for w, b in params["hidden"]:
        x = jnp.maximum(x @ w.astype(jnp.float32) + b, 0.0)
    w_row, b_out = params["out"]
    return x @ w_row.T + b_out


# ---------------------------------- main --------------------------------------
if __name__ == "__main__":
    batch = 2
    num_inputs = 4
    num_actions = 4
    hidden_sizes = [32, 32]
    seed = 0

    params = init_value_network_params(num_inputs, num_actions, hidden_sizes, seed)

    key = jax.random.PRNGKey(0)
    ks, ka = jax.random.split(key)
    state = jax.random.normal(ks, (batch, num_inputs), jnp.float32)
    action = jax.random.normal(ka, (batch, num_actions), jnp.float32)

    out = value_network_forward_jit(state, action, params)
    out = jax.block_until_ready(out)
    assert out.shape == (batch, 1)

    # Tight check vs a reference using the exact kernel arithmetic (bf16 MXU
    # operands, f32 accumulation).
    ref = _reference_forward(state, action, params)
    assert jnp.allclose(out, ref, atol=1e-4, rtol=1e-4), (out, ref)

    # Loose check vs a pure-f32 evaluation (only bf16 activation rounding differs).
    ref32 = _reference_forward_f32(state, action, params)
    assert jnp.allclose(out, ref32, atol=5e-2, rtol=5e-2), (out, ref32)

    print("KERNEL_OK")
</pallas_src>

<mosaic_0001>
module attributes {stable_mosaic.version = 11 : i64} {
  func.func @kernel(%arg0: i32, %arg1: memref<8x8xbf16, #tpu.memory_space<vmem>>, %arg2: memref<8x32xbf16, #tpu.memory_space<vmem>>, %arg3: memref<1x32xf32, #tpu.memory_space<vmem>>, %arg4: memref<32x32xbf16, #tpu.memory_space<vmem>>, %arg5: memref<1x32xf32, #tpu.memory_space<vmem>>, %arg6: memref<1x32xf32, #tpu.memory_space<vmem>>, %arg7: memref<1x1xf32, #tpu.memory_space<vmem>>, %arg8: memref<8x1xf32, #tpu.memory_space<vmem>>) attributes {dimension_semantics = [#tpu.dimension_semantics<parallel>], iteration_bounds = array<i64: 1>, scalar_prefetch = 0 : i64, scratch_operands = 0 : i64, tpu.core_type = #tpu.core_type<tc>, window_params = [{transform_indices = @transform_0, window_bounds = array<i64: 8, 8>}, {pipeline_mode = #tpu.pipeline_mode<synchronous>, transform_indices = @transform_1, window_bounds = array<i64: 8, 32>}, {pipeline_mode = #tpu.pipeline_mode<synchronous>, transform_indices = @transform_2, window_bounds = array<i64: 1, 32>}, {pipeline_mode = #tpu.pipeline_mode<synchronous>, transform_indices = @transform_3, window_bounds = array<i64: 32, 32>}, {pipeline_mode = #tpu.pipeline_mode<synchronous>, transform_indices = @transform_4, window_bounds = array<i64: 1, 32>}, {pipeline_mode = #tpu.pipeline_mode<synchronous>, transform_indices = @transform_5, window_bounds = array<i64: 1, 32>}, {pipeline_mode = #tpu.pipeline_mode<synchronous>, transform_indices = @transform_6, window_bounds = array<i64: 1, 1>}, {transform_indices = @transform_7, window_bounds = array<i64: 8, 1>}]} {
    %c0 = arith.constant 0 : index
    %c0_0 = arith.constant 0 : index
    %0 = vector.load %arg1[%c0, %c0_0] : memref<8x8xbf16, #tpu.memory_space<vmem>>, vector<8x8xbf16>
    %c0_1 = arith.constant 0 : index
    %c0_2 = arith.constant 0 : index
    %1 = vector.load %arg2[%c0_1, %c0_2] : memref<8x32xbf16, #tpu.memory_space<vmem>>, vector<8x32xbf16>
    %cst = arith.constant dense<0.000000e+00> : vector<8x32xf32>
    %2 = tpu.matmul %0, %1, %cst {dimension_numbers = #tpu.dot_dimension_numbers<[1], [0], [0], [1], [0, 0, 1, 1], [], []>} : vector<8x8xbf16>, vector<8x32xbf16>, vector<8x32xf32> -> vector<8x32xf32>
    %c0_3 = arith.constant 0 : index
    %c0_4 = arith.constant 0 : index
    %3 = vector.load %arg3[%c0_3, %c0_4] : memref<1x32xf32, #tpu.memory_space<vmem>>, vector<1x32xf32>
    %4 = vector.broadcast %3 : vector<1x32xf32> to vector<8x32xf32>
    %5 = arith.addf %2, %4 : vector<8x32xf32>
    %cst_5 = arith.constant 0.000000e+00 : f32
    %6 = vector.broadcast %cst_5 : f32 to vector<8x32xf32>
    %7 = arith.maximumf %5, %6 : vector<8x32xf32>
    %8 = arith.truncf %7 : vector<8x32xf32> to vector<8x32xbf16>
    %c0_6 = arith.constant 0 : index
    %c0_7 = arith.constant 0 : index
    %9 = vector.load %arg4[%c0_6, %c0_7] : memref<32x32xbf16, #tpu.memory_space<vmem>>, vector<32x32xbf16>
    %cst_8 = arith.constant dense<0.000000e+00> : vector<8x32xf32>
    %10 = tpu.matmul %8, %9, %cst_8 {dimension_numbers = #tpu.dot_dimension_numbers<[1], [0], [0], [1], [0, 0, 1, 1], [], []>} : vector<8x32xbf16>, vector<32x32xbf16>, vector<8x32xf32> -> vector<8x32xf32>
    %c0_9 = arith.constant 0 : index
    %c0_10 = arith.constant 0 : index
    %11 = vector.load %arg5[%c0_9, %c0_10] : memref<1x32xf32, #tpu.memory_space<vmem>>, vector<1x32xf32>
    %12 = vector.broadcast %11 : vector<1x32xf32> to vector<8x32xf32>
    %13 = arith.addf %10, %12 : vector<8x32xf32>
    %cst_11 = arith.constant 0.000000e+00 : f32
    %14 = vector.broadcast %cst_11 : f32 to vector<8x32xf32>
    %15 = arith.maximumf %13, %14 : vector<8x32xf32>
    %c0_12 = arith.constant 0 : index
    %c0_13 = arith.constant 0 : index
    %16 = vector.load %arg6[%c0_12, %c0_13] : memref<1x32xf32, #tpu.memory_space<vmem>>, vector<1x32xf32>
    %c0_14 = arith.constant 0 : index
    %c0_15 = arith.constant 0 : index
    %17 = vector.load %arg7[%c0_14, %c0_15] : memref<1x1xf32, #tpu.memory_space<vmem>>, vector<1x1xf32>
    %18 = vector.broadcast %16 : vector<1x32xf32> to vector<8x32xf32>
    %19 = arith.mulf %15, %18 : vector<8x32xf32>
    %cst_16 = arith.constant dense<0.000000e+00> : vector<8xf32>
    %20 = vector.multi_reduction <add>, %19, %cst_16 [1] : vector<8x32xf32> to vector<8xf32>
    %21 = vector.shape_cast %20 : vector<8xf32> to vector<8x1xf32>
    %22 = vector.broadcast %17 : vector<1x1xf32> to vector<8x1xf32>
    %23 = arith.addf %21, %22 : vector<8x1xf32>
    %c0_17 = arith.constant 0 : index
    %c0_18 = arith.constant 0 : index
    %24 = vector.load %arg8[%c0_17, %c0_18] : memref<8x1xf32, #tpu.memory_space<vmem>>, vector<8x1xf32>
    tpu.vector_store %arg8[%c0_17, %c0_18], %23 {strides = array<i32>} : memref<8x1xf32, #tpu.memory_space<vmem>>, vector<8x1xf32>,
    return
  }
  func.func @transform_0(%arg0: i32) -> (i32, i32) {
    %c0_i32 = arith.constant 0 : i32
    %c0_i32_0 = arith.constant 0 : i32
    return %arg0, %c0_i32 : i32, i32
  }
  func.func @transform_1(%arg0: i32) -> (i32, i32) {
    %c0_i32 = arith.constant 0 : i32
    %c0_i32_0 = arith.constant 0 : i32
    %c0_i32_1 = arith.constant 0 : i32
    return %c0_i32, %c0_i32_0 : i32, i32
  }
  func.func @transform_2(%arg0: i32) -> (i32, i32) {
    %c0_i32 = arith.constant 0 : i32
    %c0_i32_0 = arith.constant 0 : i32
    %c0_i32_1 = arith.constant 0 : i32
    return %c0_i32, %c0_i32_0 : i32, i32
  }
  func.func @transform_3(%arg0: i32) -> (i32, i32) {
    %c0_i32 = arith.constant 0 : i32
    %c0_i32_0 = arith.constant 0 : i32
    %c0_i32_1 = arith.constant 0 : i32
    return %c0_i32, %c0_i32_0 : i32, i32
  }
  func.func @transform_4(%arg0: i32) -> (i32, i32) {
    %c0_i32 = arith.constant 0 : i32
    %c0_i32_0 = arith.constant 0 : i32
    %c0_i32_1 = arith.constant 0 : i32
    return %c0_i32, %c0_i32_0 : i32, i32
  }
  func.func @transform_5(%arg0: i32) -> (i32, i32) {
    %c0_i32 = arith.constant 0 : i32
    %c0_i32_0 = arith.constant 0 : i32
    %c0_i32_1 = arith.constant 0 : i32
    return %c0_i32, %c0_i32_0 : i32, i32
  }
  func.func @transform_6(%arg0: i32) -> (i32, i32) {
    %c0_i32 = arith.constant 0 : i32
    %c0_i32_0 = arith.constant 0 : i32
    %c0_i32_1 = arith.constant 0 : i32
    return %c0_i32, %c0_i32_0 : i32, i32
  }
  func.func @transform_7(%arg0: i32) -> (i32, i32) {
    %c0_i32 = arith.constant 0 : i32
    %c0_i32_0 = arith.constant 0 : i32
    return %arg0, %c0_i32 : i32, i32
  }
}

</mosaic_0001>

<bundles_post_ra>
// kernel: value_network_forward.1
= control target key start
LH: loop header
LB: loop body
LE: loop exit
PB: predicated region body
PF: predicated region fallthrough
CT: control target
= control target key end

     0   :  { %vm42_vm0 = vcmask 1043456   ;;  %v212_v0 = vmov 0.0   ;;  %vm213_vm1 = vmmov 0   ;;  %vm38_vm2 = vcmask 64512   ;;  %s283_s1 = inlined_call_operand.vmem [shape: bf16[8,32], index: 1, kind: input, shape index: {}]   ;;  %s284_s0 = inlined_call_operand.vmem [shape: bf16[8,8], index: 0, kind: input, shape index: {}]   ;;  %s285_s3 = inlined_call_operand.vmem [shape: bf16[32,32], index: 3, kind: input, shape index: {}]   ;;  %s286_s2 = inlined_call_operand.vmem [shape: f32[1,32], index: 2, kind: input, shape index: {}]   ;;  %s287_s6 = inlined_call_operand.<no memory space> [shape: f32[1,1], index: 6, kind: input, shape index: {}]   ;;  %s288_s4 = inlined_call_operand.vmem [shape: f32[1,32], index: 4, kind: input, shape index: {}]   ;;  %s289_s5 = inlined_call_operand.vmem [shape: f32[1,32], index: 5, kind: input, shape index: {}]   ;;  %s290_s7 = inlined_call_operand.vmem [shape: f32[8,1], index: 7, kind: output, shape index: {}]  }
   0x1   :  { %194 = vmatprep.subr.bf16.mxu0 %v212_v0  ;;  %v30_v1 = vld [vmem:[%s283_s1] sm:$0xf]  ;;  %196 = vmatprep.mubr.msk.bf16.mxu0 %vm213_vm1, %v212_v0  ;;  %v211_v5 = vld [vmem:[%s285_s3 + $0x8] sm:$0xff]   ;;  %vm111_vm3 = vcmask 261120   ;;  %v12_v14 = vstv %s287_s6  ;;  %vm175_vm4 = vcmask 7168  }
   0x2   :  { %v44_v2 = vsel %vm42_vm0, %v30_v1, 0  ;;  %200 = vmatprep.subr.bf16.mxu1 %v212_v0  ;;  %204 = vmatprep.mubr.msk.bf16.mxu1 %vm213_vm1, %v212_v0  ;;  %v29_v3 = vld [vmem:[%s284_s0] sm:$0xf]  ;;  %13 = vst [vmem:[#allocation2] sm:$0x1] %v12_v14 }
   0x3   :  { %195 = vmatpush3.bf16.msra.mxu0 %v44_v2  ;;  %v210_v4 = vld [vmem:[%s285_s3] sm:$0xff]  }
   0x4   :  { %201 = vmatpush3.bf16.msra.mxu1 %v210_v4  ;;  %v181_v6 = vld [vmem:[%s286_s2] ss:$0 sm:$0xff] }
   0x5   :  { %202 = vmatprep.subr.bf16.mxu1 %v212_v0  ;;  %v183_v15 = vld [vmem:[%s288_s4] ss:$0 sm:$0xff] }
   0x6   :  { %197 = vmatmul.mubr.msk.bf16.vlgmr.msra.gmra.mrb[0].mxu0 %vm38_vm2, %v29_v3  ;;  %v187_v20 = vld [vmem:[%s289_s5] ss:$0 sm:$0xff] }
   0x8   :  { %203 = vmatpush3.bf16.msra.mxu1 %v211_v5 }
   0x9   :  { %v188_v25 = vld [vmem:[#allocation2] ss:$0 sm:$0xff] }
  0xd9   :  { %v80_v7 = vpop.f32.mrb[0].mxu0 }
  0xda   :  { %v81_v8 = vadd.f32 %v181_v6, %v80_v7  ;;  %v198_v9 = vpop.f32.mrb[1].mxu0 }
  0xdb   :  { %v83_v10 = vpop.f32.mrb[2].mxu0 }
  0xdc   :  { %v86_v11 = vmax.f32 %v81_v8, 0.0  ;;  %v199_v12 = vpop.f32.mrb[3].mxu0 }
  0xde   :  { %v87_v13 = vpack.c.bf16 %v86_v11, %v86_v11 }
  0xe0   :  { %205 = vmatmul.mubr.msk.bf16.vlgmr.msra.gmra.mrb[0].mxu1 %vm111_vm3, %v87_v13 }
 0x1b3   :  { %v149_v16 = vpop.f32.mrb[0].mxu1 }
 0x1b4   :  { %v150_v17 = vadd.f32 %v183_v15, %v149_v16  ;;  %v206_v18 = vpop.f32.mrb[1].mxu1 }
 0x1b5   :  { %v152_v19 = vpop.f32.mrb[2].mxu1 }
 0x1b6   :  { %v155_v21 = vmax.f32 %v150_v17, 0.0  ;;  %v207_v22 = vpop.f32.mrb[3].mxu1 }
 0x1b8   :  { %v164_v23 = vmul.f32 %v187_v20, %v155_v21 }
 0x1ba   :  { %v165_v24 = vsel %vm111_vm3, %v164_v23, 0.0 }
 0x1bb   :  { %166 = vadd.xlane.f32.xlu0 %v165_v24 }
 0x248   :  { %v167_v26 = vpop.xlane.xlu0 %166 }
 0x249   :  { %v174_v27 = vadd.f32 %v188_v25, %v167_v26 }
 0x24b   :  { %176 = vst.msk [vmem:[%s290_s7] sm:$0xff] %vm175_vm4, %v174_v27 }

</bundles_post_ra>
